<compile_context>
chip_gen: v7x
topology: tpu7x:2x2x1
jax: 0.10.0
libtpu: 0.0.40
codegen_flags: <defaults>
</compile_context>

<pallas_src>
import functools

import numpy as np
import jax
import jax.numpy as jnp
from jax.experimental import pallas as pl
from jax.experimental.pallas import tpu as pltpu

_LANE = 128
_SUBLANE = 8
_TARGET_BLOCK_BYTES = 2 * 1024 * 1024  # ~2 MiB per block (v5e-safe, roofline-sized)


def _exp_points():
    """12-segment chord approximation of 2**t on t in [-6, 6] (SigmoidQuant.exp_points)."""
    t = np.arange(-6.0, 7.0, 1.0)
    y_p = 2.0 ** t
    y_p_diff = y_p[1:] - y_p[:-1]
    b = y_p[1:] - y_p_diff * t[1:]
    k = y_p_diff / np.log(2)
    return k.astype(np.float32), b.astype(np.float32)


def _sigmoid_quant_kernel(x_ref, o_ref, *, neg_k, b):
    """hardtanh(-4,4) -> piecewise-linear exp(-x) -> 1/(1+.) -> 8-bit uniform quantization."""
    x = x_ref[...].astype(jnp.float32)           # compute in f32 (v5e has no bf16 VPU)
    v = jnp.clip(x, -4.0, 4.0)
    # Chord lines: -v*k[i] + b[i] == v*neg_k[i] + b[i] (negation folded into constants).
    lines = [v * neg_k[i] + b[i] for i in range(len(neg_k))]
    # Balanced max tree: same 11 maxes as a linear scan, but a log-depth dependency chain
    # so the 4 VALU slots stay busy.
    while len(lines) > 1:
        nxt = [jnp.maximum(lines[j], lines[j + 1]) for j in range(0, len(lines) - 1, 2)]
        if len(lines) % 2:
            nxt.append(lines[-1])
        lines = nxt
    x_exp = lines[0]
    out = 1.0 / (1.0 + x_exp)                    # ~ sigmoid(x); f32 divide (EUP path)
    out = jnp.round(out * 255.0) * (1.0 / 255.0)
    o_ref[...] = out.astype(o_ref.dtype)


def sigmoid_quant(x, *, block_bytes=_TARGET_BLOCK_BYTES):
    """JAX/Pallas equivalent of SigmoidQuant.forward."""
    orig_shape = x.shape
    orig_dtype = x.dtype
    n = x.size
    if n == 0:
        return x
    itemsize = jnp.dtype(orig_dtype).itemsize

    # Pick the widest lane count that divides n (no padding copy for typical conv
    # activation sizes); only ragged sizes pay a pad-to-128 copy.
    pad = 0
    if n < _LANE:
        cols = n                                   # last dim == full dim -> legal block
    else:
        for c in (1024, 512, 256, _LANE):
            if n % c == 0:
                cols = c
                break
        else:
            cols = _LANE
            pad = (-n) % _LANE

    flat = x.reshape(-1)
    if pad:
        flat = jnp.pad(flat, (0, pad))
    rows = flat.size // cols
    slab = flat.reshape(rows, cols)

    # ~block_bytes per input block; sublane dim aligned for the dtype's packing
    # (8 rows for f32, 16 for bf16, 32 for int8). The last grid block may be ragged
    # (Pallas masks it) instead of shrinking the tile.
    row_align = _SUBLANE * max(1, 4 // itemsize)
    tile_rows = (block_bytes // (cols * itemsize)) // row_align * row_align
    tile_rows = max(row_align, tile_rows)
    if tile_rows >= rows:
        tile_rows = rows                           # single block covering the whole slab
    grid = (pl.cdiv(rows, tile_rows),)

    k_np, b_np = _exp_points()
    kernel = functools.partial(
        _sigmoid_quant_kernel,
        neg_k=[-float(v) for v in k_np],
        b=[float(v) for v in b_np],
    )

    # Advisory cost for XLA scheduling around this custom call:
    # per element ~ clamp(2) + 12*(mul+add) + 11*max + add + div + 2*mul + round ≈ 42 flops.
    cost = pl.CostEstimate(
        flops=42 * n, transcendentals=0, bytes_accessed=2 * n * itemsize
    )

    out_slab = pl.pallas_call(
        kernel,
        out_shape=jax.ShapeDtypeStruct((rows, cols), orig_dtype),
        grid_spec=pltpu.PrefetchScalarGridSpec(
            num_scalar_prefetch=0,
            grid=grid,
            in_specs=[pl.BlockSpec((tile_rows, cols), lambda i: (i, 0))],
            out_specs=pl.BlockSpec((tile_rows, cols), lambda i: (i, 0)),
        ),
        compiler_params=pltpu.CompilerParams(
            dimension_semantics=("parallel",),
        ),
        cost_estimate=cost,
    )(slab)

    if pad:
        return out_slab.reshape(-1)[:n].reshape(orig_shape)
    return out_slab.reshape(orig_shape)


def _reference(x):
    """Pure-JAX replica of SigmoidQuant.forward."""
    k_np, b_np = _exp_points()
    k = jnp.asarray(k_np)
    b = jnp.asarray(b_np)
    xc = jnp.clip(x.astype(jnp.float32), -4.0, 4.0)
    x_seg = -xc[..., None] * k + b
    x_exp = jnp.max(x_seg, axis=-1)
    out = 1.0 / (1.0 + x_exp)
    out = jnp.round(out * 255.0) / 255.0
    return out.astype(x.dtype)


if __name__ == "__main__":
    key = jax.random.PRNGKey(0)
    # NCHW input, like a PyTorch conv activation.
    x = jax.random.normal(key, (2, 4, 16, 16), dtype=jnp.float32) * 3.0

    out = sigmoid_quant(x)
    out = jax.block_until_ready(out)

    ref = _reference(x)
    assert out.shape == x.shape and out.dtype == x.dtype

    # Exact match expected; tolerate (at most) a handful of 1-LSB (1/255) flips that
    # could arise from differing float contraction between the kernel and the XLA reference.
    diff = jnp.abs(out.astype(jnp.float32) - ref.astype(jnp.float32))
    assert float(jnp.max(diff)) <= (1.0 / 255.0) + 1e-6, "mismatch vs reference"
    assert float(jnp.mean((diff < 1e-6).astype(jnp.float32))) > 0.999, "too many LSB flips"

    print("KERNEL_OK")
</pallas_src>

<mosaic_0001>
module attributes {stable_mosaic.version = 11 : i64} {
  func.func @_sigmoid_quant_kernel(%arg0: i32, %arg1: memref<2x1024xf32, #tpu.memory_space<vmem>>, %arg2: memref<2x1024xf32, #tpu.memory_space<vmem>>) attributes {dimension_semantics = [#tpu.dimension_semantics<parallel>], iteration_bounds = array<i64: 1>, scalar_prefetch = 0 : i64, scratch_operands = 0 : i64, tpu.core_type = #tpu.core_type<tc>, window_params = [{transform_indices = @transform_0, window_bounds = array<i64: 2, 1024>}, {transform_indices = @transform_1, window_bounds = array<i64: 2, 1024>}]} {
    %c0 = arith.constant 0 : index
    %c0_0 = arith.constant 0 : index
    %0 = vector.load %arg1[%c0, %c0_0] : memref<2x1024xf32, #tpu.memory_space<vmem>>, vector<2x1024xf32>
    %cst = arith.constant -4.000000e+00 : f32
    %cst_1 = arith.constant 4.000000e+00 : f32
    %1 = vector.broadcast %cst : f32 to vector<2x1024xf32>
    %2 = arith.maximumf %1, %0 : vector<2x1024xf32>
    %3 = vector.broadcast %cst_1 : f32 to vector<2x1024xf32>
    %4 = arith.minimumf %3, %2 : vector<2x1024xf32>
    %cst_2 = arith.constant -0.0225421097 : f32
    %5 = vector.broadcast %cst_2 : f32 to vector<2x1024xf32>
    %6 = arith.mulf %4, %5 : vector<2x1024xf32>
    %cst_3 = arith.constant 1.093750e-01 : f32
    %7 = vector.broadcast %cst_3 : f32 to vector<2x1024xf32>
    %8 = arith.addf %6, %7 : vector<2x1024xf32>
    %cst_4 = arith.constant -0.0450842194 : f32
    %9 = vector.broadcast %cst_4 : f32 to vector<2x1024xf32>
    %10 = arith.mulf %4, %9 : vector<2x1024xf32>
    %cst_5 = arith.constant 1.875000e-01 : f32
    %11 = vector.broadcast %cst_5 : f32 to vector<2x1024xf32>
    %12 = arith.addf %10, %11 : vector<2x1024xf32>
    %cst_6 = arith.constant -0.0901684388 : f32
    %13 = vector.broadcast %cst_6 : f32 to vector<2x1024xf32>
    %14 = arith.mulf %4, %13 : vector<2x1024xf32>
    %cst_7 = arith.constant 3.125000e-01 : f32
    %15 = vector.broadcast %cst_7 : f32 to vector<2x1024xf32>
    %16 = arith.addf %14, %15 : vector<2x1024xf32>
    %cst_8 = arith.constant -0.180336878 : f32
    %17 = vector.broadcast %cst_8 : f32 to vector<2x1024xf32>
    %18 = arith.mulf %4, %17 : vector<2x1024xf32>
    %cst_9 = arith.constant 5.000000e-01 : f32
    %19 = vector.broadcast %cst_9 : f32 to vector<2x1024xf32>
    %20 = arith.addf %18, %19 : vector<2x1024xf32>
    %cst_10 = arith.constant -0.360673755 : f32
    %21 = vector.broadcast %cst_10 : f32 to vector<2x1024xf32>
    %22 = arith.mulf %4, %21 : vector<2x1024xf32>
    %cst_11 = arith.constant 7.500000e-01 : f32
    %23 = vector.broadcast %cst_11 : f32 to vector<2x1024xf32>
    %24 = arith.addf %22, %23 : vector<2x1024xf32>
    %cst_12 = arith.constant -0.72134751 : f32
    %25 = vector.broadcast %cst_12 : f32 to vector<2x1024xf32>
    %26 = arith.mulf %4, %25 : vector<2x1024xf32>
    %cst_13 = arith.constant 1.000000e+00 : f32
    %27 = vector.broadcast %cst_13 : f32 to vector<2x1024xf32>
    %28 = arith.addf %26, %27 : vector<2x1024xf32>
    %cst_14 = arith.constant -1.44269502 : f32
    %29 = vector.broadcast %cst_14 : f32 to vector<2x1024xf32>
    %30 = arith.mulf %4, %29 : vector<2x1024xf32>
    %cst_15 = arith.constant 1.000000e+00 : f32
    %31 = vector.broadcast %cst_15 : f32 to vector<2x1024xf32>
    %32 = arith.addf %30, %31 : vector<2x1024xf32>
    %cst_16 = arith.constant -2.885390e+00 : f32
    %33 = vector.broadcast %cst_16 : f32 to vector<2x1024xf32>
    %34 = arith.mulf %4, %33 : vector<2x1024xf32>
    %cst_17 = arith.constant 0.000000e+00 : f32
    %35 = vector.broadcast %cst_17 : f32 to vector<2x1024xf32>
    %36 = arith.addf %34, %35 : vector<2x1024xf32>
    %cst_18 = arith.constant -5.770780e+00 : f32
    %37 = vector.broadcast %cst_18 : f32 to vector<2x1024xf32>
    %38 = arith.mulf %4, %37 : vector<2x1024xf32>
    %cst_19 = arith.constant -4.000000e+00 : f32
    %39 = vector.broadcast %cst_19 : f32 to vector<2x1024xf32>
    %40 = arith.addf %38, %39 : vector<2x1024xf32>
    %cst_20 = arith.constant -11.5415602 : f32
    %41 = vector.broadcast %cst_20 : f32 to vector<2x1024xf32>
    %42 = arith.mulf %4, %41 : vector<2x1024xf32>
    %cst_21 = arith.constant -1.600000e+01 : f32
    %43 = vector.broadcast %cst_21 : f32 to vector<2x1024xf32>
    %44 = arith.addf %42, %43 : vector<2x1024xf32>
    %cst_22 = arith.constant -23.0831203 : f32
    %45 = vector.broadcast %cst_22 : f32 to vector<2x1024xf32>
    %46 = arith.mulf %4, %45 : vector<2x1024xf32>
    %cst_23 = arith.constant -4.800000e+01 : f32
    %47 = vector.broadcast %cst_23 : f32 to vector<2x1024xf32>
    %48 = arith.addf %46, %47 : vector<2x1024xf32>
    %cst_24 = arith.constant -46.1662407 : f32
    %49 = vector.broadcast %cst_24 : f32 to vector<2x1024xf32>
    %50 = arith.mulf %4, %49 : vector<2x1024xf32>
    %cst_25 = arith.constant -1.280000e+02 : f32
    %51 = vector.broadcast %cst_25 : f32 to vector<2x1024xf32>
    %52 = arith.addf %50, %51 : vector<2x1024xf32>
    %53 = arith.maximumf %8, %12 : vector<2x1024xf32>
    %54 = arith.maximumf %16, %20 : vector<2x1024xf32>
    %55 = arith.maximumf %24, %28 : vector<2x1024xf32>
    %56 = arith.maximumf %32, %36 : vector<2x1024xf32>
    %57 = arith.maximumf %40, %44 : vector<2x1024xf32>
    %58 = arith.maximumf %48, %52 : vector<2x1024xf32>
    %59 = arith.maximumf %53, %54 : vector<2x1024xf32>
    %60 = arith.maximumf %55, %56 : vector<2x1024xf32>
    %61 = arith.maximumf %57, %58 : vector<2x1024xf32>
    %62 = arith.maximumf %59, %60 : vector<2x1024xf32>
    %63 = arith.maximumf %62, %61 : vector<2x1024xf32>
    %cst_26 = arith.constant 1.000000e+00 : f32
    %64 = vector.broadcast %cst_26 : f32 to vector<2x1024xf32>
    %65 = arith.addf %64, %63 : vector<2x1024xf32>
    %cst_27 = arith.constant 1.000000e+00 : f32
    %66 = vector.broadcast %cst_27 : f32 to vector<2x1024xf32>
    %67 = arith.divf %66, %65 : vector<2x1024xf32>
    %cst_28 = arith.constant 2.550000e+02 : f32
    %68 = vector.broadcast %cst_28 : f32 to vector<2x1024xf32>
    %69 = arith.mulf %67, %68 : vector<2x1024xf32>
    %70 = math.roundeven %69 : vector<2x1024xf32>
    %cst_29 = arith.constant 0.00392156886 : f32
    %71 = vector.broadcast %cst_29 : f32 to vector<2x1024xf32>
    %72 = arith.mulf %70, %71 : vector<2x1024xf32>
    %c0_30 = arith.constant 0 : index
    %c0_31 = arith.constant 0 : index
    %73 = vector.load %arg2[%c0_30, %c0_31] : memref<2x1024xf32, #tpu.memory_space<vmem>>, vector<2x1024xf32>
    tpu.vector_store %arg2[%c0_30, %c0_31], %72 {strides = array<i32>} : memref<2x1024xf32, #tpu.memory_space<vmem>>, vector<2x1024xf32>,
    return
  }
  func.func @transform_0(%arg0: i32) -> (i32, i32) {
    %c0_i32 = arith.constant 0 : i32
    %c0_i32_0 = arith.constant 0 : i32
    return %arg0, %c0_i32 : i32, i32
  }
  func.func @transform_1(%arg0: i32) -> (i32, i32) {
    %c0_i32 = arith.constant 0 : i32
    %c0_i32_0 = arith.constant 0 : i32
    return %arg0, %c0_i32 : i32, i32
  }
}

</mosaic_0001>

<bundles_post_ra>
// kernel: tpu_custom_call.1
= control target key start
LH: loop header
LB: loop body
LE: loop exit
PB: predicated region body
PF: predicated region fallthrough
CT: control target
= control target key end

     0   :  { %6 = vsyncpa [#allocation3], 0  ;;  %s220_s0 = inlined_call_operand.hbm [shape: f32[2,1024], index: 0, kind: input, shape index: {}]   ;;  %s221_s1 = inlined_call_operand.hbm [shape: f32[2,1024], index: 1, kind: output, shape index: {}]  }
   0x1   :  { %7 = vsyncpa [#allocation4], 0  ;;  %s184_s6 = smov [#allocation2]   ;;  %s136_s10 = scalar_lea.hbm %s220_s0, 256 }
   0x2   :  { %s14_s7 = sshll.u32 %s184_s6, 4  ;;  %p137_p0 = scmp.ne.s32.totalorder %s220_s0, %s136_s10  ;;  %s15_s7 = int_to_ptr.vmem [resolvable:$true] %s14_s7 }
   0x3   :  { %p140_p1 = scmp.lt.u32.totalorder %s136_s10, %s220_s0 }
   0x5   :  { %p142_p2 = pnand %p140_p1, %p137_p0 }
   0x7   :  { %145 = shalt.err (!%p142_p2)
}
   0x8   :  { %s146_s15 = scalar_lea.vmem %s15_s7, 256  ;;  %p151_p4 = scmp.lt.s32.totalorder %s15_s7, %s15_s7 }
   0x9   :  { %p147_p3 = scmp.ne.s32.totalorder %s15_s7, %s146_s15  ;;  %p152_p5 = scmp.lt.s32.totalorder %s146_s15, %s146_s15 }
   0xb   :  { %p153_p6 = por %p152_p5, %p151_p4 }
   0xd   :  { %p154_p7 = pnand %p153_p6, %p147_p3 }
   0xf   :  { %157 = shalt.err (!%p154_p7)
}
  0x10   :  { %17 = dma.hbm_to_vmem [thread:$0]  %s220_s0, 256, %s15_s7, [#allocation3]  }
  0x11   :  { %180 = dma.done.wait [#allocation3], 256  }
  0x12   :  { %181 = vsyncadd [#allocation3], 4294967040  ;;  %v21_v0 = vld [vmem:[#allocation2] sm:$0xff]  ;;  %v22_v1 = vld [vmem:[#allocation2 + $0x8] sm:$0xff]  ;;  %s185_s0 = smov [#allocation5]  }
  0x13   :  { %v126_v2 = vclamps-f32 %v21_v0, 4.0  ;;  %v127_v3 = vclamps-f32 %v22_v1, 4.0  ;;  %s117_s18 = sshll.u32 %s185_s0, 4  ;;  %s118_s18 = int_to_ptr.vmem [resolvable:$true] %s117_s18 }
  0x14   :  { %s158_s19 = scalar_lea.vmem %s118_s18, 256  ;;  %p163_p9 = scmp.lt.s32.totalorder %s118_s18, %s118_s18 }
  0x15   :  { %v27_v4 = vmul.f32 -0.02254211, %v126_v2  ;;  %v31_v5 = vmul.f32 -0.04508422, %v126_v2  ;;  %v35_v6 = vmul.f32 -0.09016844, %v126_v2  ;;  %p159_p8 = scmp.ne.s32.totalorder %s118_s18, %s158_s19  ;;  %p164_p10 = scmp.lt.s32.totalorder %s158_s19, %s158_s19 }
  0x16   :  { %v39_v7 = vmul.f32 -0.18033688, %v126_v2  ;;  %v43_v8 = vmul.f32 -0.36067376, %v126_v2  ;;  %v47_v9 = vmul.f32 -0.7213475, %v126_v2 }
  0x17   :  { %v29_v10 = vadd.f32 0.109375, %v27_v4  ;;  %v33_v11 = vadd.f32 0.1875, %v31_v5  ;;  %v37_v12 = vadd.f32 0.3125, %v35_v6  ;;  %v51_v13 = vmul.f32 -1.442695, %v126_v2  ;;  %p165_p11 = por %p164_p10, %p163_p9 }
  0x18   :  { %v41_v14 = vadd.f32 0.5, %v39_v7  ;;  %v45_v15 = vadd.f32 0.75, %v43_v8  ;;  %v49_v16 = vadd.f32 1.0, %v47_v9  ;;  %v55_v17 = vmul.f32 -2.88539, %v126_v2 }
  0x19   :  { %v53_v18 = vadd.f32 1.0, %v51_v13  ;;  %v59_v19 = vmul.f32 -5.77078, %v126_v2  ;;  %v63_v20 = vmul.f32 -11.54156, %v126_v2  ;;  %v75_v21 = vmax.f32 %v29_v10, %v33_v11  ;;  %p166_p12 = pnand %p165_p11, %p159_p8 }
  0x1a   :  { %v67_v22 = vmul.f32 -23.08312, %v126_v2  ;;  %v71_v23 = vmul.f32 -46.16624, %v126_v2  ;;  %v77_v24 = vmax.f32 %v37_v12, %v41_v14  ;;  %v79_v25 = vmax.f32 %v45_v15, %v49_v16 }
  0x1b   :  { %v61_v26 = vadd.f32 -4.0, %v59_v19  ;;  %v65_v27 = vadd.f32 -16.0, %v63_v20  ;;  %v81_v28 = vmax.f32 %v53_v18, %v55_v17  ;;  %v28_v29 = vmul.f32 -0.02254211, %v127_v3 }
  0x1c   :  { %v69_v30 = vadd.f32 -48.0, %v67_v22  ;;  %v73_v31 = vadd.f32 -128.0, %v71_v23  ;;  %v87_v32 = vmax.f32 %v75_v21, %v77_v24  ;;  %v32_v33 = vmul.f32 -0.04508422, %v127_v3 }
  0x1d   :  { %v83_v34 = vmax.f32 %v61_v26, %v65_v27  ;;  %v89_v35 = vmax.f32 %v79_v25, %v81_v28  ;;  %v30_v36 = vadd.f32 0.109375, %v28_v29  ;;  %v36_v37 = vmul.f32 -0.09016844, %v127_v3 }
  0x1e   :  { %v85_v38 = vmax.f32 %v69_v30, %v73_v31  ;;  %v34_v39 = vadd.f32 0.1875, %v32_v33  ;;  %v40_v40 = vmul.f32 -0.18033688, %v127_v3  ;;  %v44_v41 = vmul.f32 -0.36067376, %v127_v3 }
  0x1f   :  { %v93_v42 = vmax.f32 %v87_v32, %v89_v35  ;;  %v38_v43 = vadd.f32 0.3125, %v36_v37  ;;  %v48_v44 = vmul.f32 -0.7213475, %v127_v3  ;;  %v52_v45 = vmul.f32 -1.442695, %v127_v3 }
  0x20   :  { %v91_v46 = vmax.f32 %v83_v34, %v85_v38  ;;  %v42_v47 = vadd.f32 0.5, %v40_v40  ;;  %v46_v48 = vadd.f32 0.75, %v44_v41  ;;  %v56_v49 = vmul.f32 -2.88539, %v127_v3 }
  0x21   :  { %v50_v50 = vadd.f32 1.0, %v48_v44  ;;  %v54_v51 = vadd.f32 1.0, %v52_v45  ;;  %v60_v52 = vmul.f32 -5.77078, %v127_v3  ;;  %v64_v53 = vmul.f32 -11.54156, %v127_v3 }
  0x22   :  { %v95_v54 = vmax.f32 %v93_v42, %v91_v46  ;;  %v68_v55 = vmul.f32 -23.08312, %v127_v3  ;;  %v72_v56 = vmul.f32 -46.16624, %v127_v3  ;;  %v76_v57 = vmax.f32 %v30_v36, %v34_v39 }
  0x23   :  { %v62_v58 = vadd.f32 -4.0, %v60_v52  ;;  %v66_v59 = vadd.f32 -16.0, %v64_v53  ;;  %v78_v60 = vmax.f32 %v38_v43, %v42_v47  ;;  %v80_v61 = vmax.f32 %v46_v48, %v50_v50 }
  0x24   :  { %v97_v62 = vadd.f32 1.0, %v95_v54  ;;  %v70_v63 = vadd.f32 -48.0, %v68_v55  ;;  %v74_v0 = vadd.f32 -128.0, %v72_v56  ;;  %v82_v1 = vmax.f32 %v54_v51, %v56_v49 }
  0x25   :  { %v84_v2 = vmax.f32 %v62_v58, %v66_v59  ;;  %v88_v4 = vmax.f32 %v76_v57, %v78_v60 }
  0x26   :  { %132 = vrcp.f32 %v97_v62  ;;  %v86_v5 = vmax.f32 %v70_v63, %v74_v0  ;;  %v90_v6 = vmax.f32 %v80_v61, %v82_v1 }
  0x28   :  { %v92_v7 = vmax.f32 %v84_v2, %v86_v5  ;;  %v94_v8 = vmax.f32 %v88_v4, %v90_v6 }
  0x2a   :  { %v96_v9 = vmax.f32 %v94_v8, %v92_v7 }
  0x2c   :  { %v98_v10 = vadd.f32 1.0, %v96_v9 }
  0x2e   :  { %134 = vrcp.f32 %v98_v10 }
  0x30   :  { %v133_v3 = vpop.eup %132 }
  0x31   :  { %v103_v11 = vmul.f32 255.0, %v133_v3 }
  0x33   :  { %v128_v12 = vround.rtne.f32 %v103_v11 }
  0x35   :  { %v107_v13 = vmul.f32 0.003921569, %v128_v12 }
  0x37   :  { %109 = vst [vmem:[#allocation5] sm:$0xff] %v107_v13 }
  0x38   :  { %v135_v14 = vpop.eup %134 }
  0x39   :  { %v104_v15 = vmul.f32 255.0, %v135_v14 }
  0x3b   :  { %v129_v16 = vround.rtne.f32 %v104_v15 }
  0x3d   :  { %v108_v17 = vmul.f32 0.003921569, %v129_v16 }
  0x3f   :  { %110 = vst [vmem:[#allocation5 + $0x8] sm:$0xff] %v108_v17 }
  0x40   :  { %169 = shalt.err (!%p166_p12)
}
  0x41   :  { %s170_s22 = scalar_lea.hbm %s221_s1, 256 }
  0x42   :  { %p171_p13 = scmp.ne.s32.totalorder %s221_s1, %s170_s22  ;;  %p174_p0 = scmp.lt.u32.totalorder %s170_s22, %s221_s1 }
  0x44   :  { %p176_p1 = pnand %p174_p0, %p171_p13 }
  0x46   :  { %179 = shalt.err (!%p176_p1)
}
  0x47   :  { %120 = dma.vmem_to_hbm [thread:$0]  %s118_s18, 256, %s221_s1, [#allocation4]  }
  0x48   :  { %182 = dma.done.wait [#allocation4], 256  }
  0x49   :  { %183 = vsyncadd [#allocation4], 4294967040 }
  0x4a   :  { %124 = vsyncpa [#allocation3], 1 }
  0x4b   :  { %125 = vsyncpa [#allocation4], 1 }

</bundles_post_ra>
